<compile_context>
chip_gen: v7x
topology: tpu7x:2x2x1
jax: 0.10.0
libtpu: 0.0.40
codegen_flags: <defaults>
</compile_context>

<pallas_src>
import numpy as np

import jax
import jax.numpy as jnp
from jax.experimental import pallas as pl
from jax.experimental.pallas import tpu as pltpu


def _band_matrix(tl: int, scale: int) -> np.ndarray:
    """Band interpolation matrix B (tl+2, tl*scale) for linear upsample,
    align_corners=False, in *edge-padded* index space:
        out_tile[:, p] = sum_q conv_pad[:, j*tl + q] * B[q, p]
    where conv_pad has one replicated column prepended and appended.  The +1 shift
    below moves source coordinates into padded-index space; together with the edge
    replication this reproduces PyTorch's boundary clamping exactly."""
    tlout = tl * scale
    p = np.arange(tlout, dtype=np.float64)
    src = (p + 0.5) / scale - 0.5 + 1.0          # +1: padded-index space
    idx0 = np.floor(src).astype(np.int64)
    lam = src - idx0                             # multiples of 1/16 -> exact in bf16
    cols = np.arange(tlout)
    band = np.zeros((tl + 2, tlout), dtype=np.float32)
    band[idx0, cols] += (1.0 - lam)
    band[idx0 + 1, cols] += lam
    return band


def _descriptor_head_kernel(x_ref, w_ref, b_ref, band_ref, o_ref, conv_ref):
    # x_ref:    (G, C, L)              batch group, native NCL layout
    # w_ref:    (D, C)                 conv1x1 weight (PyTorch layout, k dim dropped)
    # b_ref:    (D, 1)                 conv bias
    # band_ref: (TL+2, TLOUT)          tile-invariant 2-tap band matrix (bf16)
    # o_ref:    (G, D, TLOUT)          lane-dense output tile
    # conv_ref: (n_tiles, G*D, TL+2)   banded, edge-padded conv cache (bf16)
    g_sz, _, l = x_ref.shape
    d = w_ref.shape[0]
    n_tiles, _, tl_p2 = conv_ref.shape
    tl = tl_p2 - 2
    j = pl.program_id(1)

    # Compute the 1x1 conv once per batch group (first Lout tile) and cache it, pre-cut
    # into the per-tile bands (with one edge-replicated column on each side).
    @pl.when(j == 0)
    def _():
        for g in range(g_sz):
            cg = jnp.dot(w_ref[...], x_ref[g],
                         preferred_element_type=jnp.float32) + b_ref[...]     # (D, L)
            cg = jnp.concatenate([cg[:, :1], cg, cg[:, l - 1:l]], axis=1)     # (D, L+2)
            cg = cg.astype(conv_ref.dtype)
            for t in range(n_tiles):
                conv_ref[t, g * d:(g + 1) * d, :] = cg[:, t * tl: t * tl + tl + 2]

    # Upsample this Lout tile: one bf16 MXU dot per step, f32 accumulation.
    res = jnp.dot(conv_ref[j], band_ref[...],
                  preferred_element_type=jnp.float32)                         # (G*D, TLOUT)
    for g in range(g_sz):
        o_ref[g] = res[g * d:(g + 1) * d, :].astype(o_ref.dtype)


def _choose_tiling(n, c, l, d, scale, compute_bytes):
    """Pick (batch group G, length tile TL) under a ~36 MiB VMEM budget.  Prefer large
    G (MXU row occupancy), then large TL (fewer grid steps / bigger DMAs)."""
    g_cands = [x for x in (8, 4, 2, 1) if n % x == 0]
    tl_cands = [x for x in (256, 128, 64, 32, 16) if l % x == 0] or [l]

    def footprint(g, tl):
        n_tiles = l // tl
        tlout = tl * scale
        lanes = -(-(tl + 2) // 128) * 128            # lane-padded scratch width
        x_b = 2 * g * c * l * 4                      # double-buffered input block
        o_b = 2 * g * d * tlout * 4                  # double-buffered output block
        band_b = 2 * (tl + 2) * tlout * compute_bytes
        conv_b = n_tiles * g * d * lanes * compute_bytes
        misc = 2 * d * (c + 1) * 4
        return x_b + o_b + band_b + conv_b + misc

    budget = 36 * 1024 * 1024
    for g in g_cands:
        for tl in tl_cands:
            est = footprint(g, tl)
            if est <= budget:
                return g, tl, est
    g, tl = g_cands[-1], tl_cands[-1]
    return g, tl, footprint(g, tl)


def descriptor_head_1d(x_ncl, weight_dc, bias_d, scale: int = 8,
                       compute_dtype=jnp.bfloat16):
    """x_ncl: (N, C, L) float32.  weight_dc: (D, C) (PyTorch Conv1d weight with the
    trailing k=1 dim dropped).  bias_d: (D,).  Returns (N, D, L*scale) float32."""
    n, c, l = x_ncl.shape
    d = weight_dc.shape[0]
    l_out = l * scale
    compute_bytes = jnp.dtype(compute_dtype).itemsize

    g, tl, vmem_est = _choose_tiling(n, c, l, d, scale, compute_bytes)
    n_groups = n // g
    n_tiles = l // tl
    tlout = tl * scale

    band = jnp.asarray(_band_matrix(tl, scale), dtype=compute_dtype)   # (TL+2, TLOUT)
    b_d1 = bias_d.reshape(d, 1).astype(jnp.float32)

    # Only raise the scoped-VMEM limit when the estimate actually needs it; keep the
    # cap below v7x's 64 MiB physical VMEM.
    vmem_limit = None
    if vmem_est > 16 * 1024 * 1024:
        vmem_limit = int(min(vmem_est * 1.25 + (4 << 20), 56 << 20))

    return pl.pallas_call(
        _descriptor_head_kernel,
        out_shape=jax.ShapeDtypeStruct((n, d, l_out), jnp.float32),
        grid_spec=pltpu.PrefetchScalarGridSpec(
            num_scalar_prefetch=0,
            grid=(n_groups, n_tiles),
            in_specs=[
                pl.BlockSpec((g, c, l), lambda b, j: (b, 0, 0)),       # x (NCL, native)
                pl.BlockSpec((d, c), lambda b, j: (0, 0)),             # conv weight
                pl.BlockSpec((d, 1), lambda b, j: (0, 0)),             # conv bias
                pl.BlockSpec((tl + 2, tlout), lambda b, j: (0, 0)),    # band matrix
            ],
            out_specs=pl.BlockSpec((g, d, tlout), lambda b, j: (b, 0, j)),
            scratch_shapes=[pltpu.VMEM((n_tiles, g * d, tl + 2), compute_dtype)],
        ),
        compiler_params=pltpu.CompilerParams(
            # Batch-group axis parallel (megacore / 2-TC sharding on v7x); the Lout
            # tile axis is sequential because the banded conv scratch is carried.
            dimension_semantics=("parallel", "arbitrary"),
            vmem_limit_bytes=vmem_limit),
    )(x_ncl, weight_dc, b_d1, band)


def _dense_upsample_matrix_t(l_in: int, scale: int) -> np.ndarray:
    """Exact PyTorch align_corners=False upsample matrix (reference only)."""
    l_out = l_in * scale
    i = np.arange(l_out, dtype=np.float64)
    src = (i + 0.5) / scale - 0.5
    src = np.maximum(src, 0.0)                      # PyTorch clamps negatives to 0
    idx0 = np.minimum(np.floor(src).astype(np.int64), l_in - 1)
    idx1 = np.minimum(idx0 + 1, l_in - 1)
    lam = src - idx0
    cols = np.arange(l_out)
    ut = np.zeros((l_in, l_out), dtype=np.float64)
    ut[idx0, cols] += 1.0 - lam
    ut[idx1, cols] += lam
    return ut


def _reference(x_ncl, weight_dc, bias_d, scale: int = 8):
    """Pure-JAX f32 reference of the module's forward pass."""
    conv = jnp.einsum("ncl,dc->ndl", x_ncl, weight_dc) + bias_d[None, :, None]
    ut = jnp.asarray(_dense_upsample_matrix_t(x_ncl.shape[-1], scale), jnp.float32)
    return jnp.einsum("ndl,lo->ndo", conv, ut)


if __name__ == "__main__":
    # Small shapes consistent with the module: Conv1d(C_in -> D, k=1), upsample x8.
    N, C_IN, L = 2, 8, 16
    DESC_DIM = 32

    key = jax.random.PRNGKey(0)
    kx, kw, kb = jax.random.split(key, 3)
    x = jax.random.normal(kx, (N, C_IN, L), dtype=jnp.float32)
    # PyTorch conv weight is (D, C, 1); drop the trailing 1.
    weight = jax.random.normal(kw, (DESC_DIM, C_IN), dtype=jnp.float32) * 0.1
    bias = jax.random.normal(kb, (DESC_DIM,), dtype=jnp.float32) * 0.1

    out = descriptor_head_1d(x, weight, bias)
    out = jax.block_until_ready(out)

    ref = _reference(x, weight, bias)
    assert out.shape == (N, DESC_DIM, L * 8), out.shape
    # bf16 conv intermediate (per perf review) -> loosened tolerance.  The band
    # weights (multiples of 1/16) are exact in bf16; only the conv output rounds.
    max_err = float(jnp.max(jnp.abs(out - ref)))
    assert jnp.allclose(out, ref, atol=1e-2, rtol=1e-2), f"mismatch, max_err={max_err}"

    print("KERNEL_OK")
</pallas_src>

<mosaic_0001>
module attributes {stable_mosaic.version = 11 : i64} {
  func.func @_descriptor_head_kernel(%arg0: i32, %arg1: i32, %arg2: memref<2x8x16xf32, #tpu.memory_space<vmem>>, %arg3: memref<32x8xf32, #tpu.memory_space<vmem>>, %arg4: memref<32x1xf32, #tpu.memory_space<vmem>>, %arg5: memref<18x128xbf16, #tpu.memory_space<vmem>>, %arg6: memref<2x32x128xf32, #tpu.memory_space<vmem>>, %arg7: memref<1x64x18xbf16, #tpu.memory_space<vmem>>) attributes {dimension_semantics = [#tpu.dimension_semantics<parallel>, #tpu.dimension_semantics<arbitrary>], iteration_bounds = array<i64: 1, 1>, scalar_prefetch = 0 : i64, scratch_operands = 1 : i64, tpu.core_type = #tpu.core_type<tc>, window_params = [{transform_indices = @transform_0, window_bounds = array<i64: 2, 8, 16>}, {pipeline_mode = #tpu.pipeline_mode<synchronous>, transform_indices = @transform_1, window_bounds = array<i64: 32, 8>}, {pipeline_mode = #tpu.pipeline_mode<synchronous>, transform_indices = @transform_2, window_bounds = array<i64: 32, 1>}, {pipeline_mode = #tpu.pipeline_mode<synchronous>, transform_indices = @transform_3, window_bounds = array<i64: 18, 128>}, {transform_indices = @transform_4, window_bounds = array<i64: 2, 32, 128>}]} {
    %c0_i32 = arith.constant 0 : i32
    %0 = arith.cmpi eq, %arg1, %c0_i32 : i32
    %1 = arith.extui %0 : i1 to i32
    %c0_i32_0 = arith.constant 0 : i32
    %2 = arith.cmpi ne, %1, %c0_i32_0 : i32
    scf.if %2 {
      %c0_9 = arith.constant 0 : index
      %c0_10 = arith.constant 0 : index
      %16 = vector.load %arg3[%c0_9, %c0_10] : memref<32x8xf32, #tpu.memory_space<vmem>>, vector<32x8xf32>
      %c0_11 = arith.constant 0 : index
      %c0_12 = arith.constant 0 : index
      %c0_13 = arith.constant 0 : index
      %17 = vector.load %arg2[%c0_11, %c0_12, %c0_13] : memref<2x8x16xf32, #tpu.memory_space<vmem>>, vector<1x8x16xf32>
      %18 = vector.shape_cast %17 : vector<1x8x16xf32> to vector<8x16xf32>
      %cst_14 = arith.constant dense<0.000000e+00> : vector<32x16xf32>
      %19 = tpu.matmul %16, %18, %cst_14 {dimension_numbers = #tpu.dot_dimension_numbers<[1], [0], [0], [1], [0, 0, 1, 1], [], []>} : vector<32x8xf32>, vector<8x16xf32>, vector<32x16xf32> -> vector<32x16xf32>
      %c0_15 = arith.constant 0 : index
      %c0_16 = arith.constant 0 : index
      %20 = vector.load %arg4[%c0_15, %c0_16] : memref<32x1xf32, #tpu.memory_space<vmem>>, vector<32x1xf32>
      %21 = vector.broadcast %20 : vector<32x1xf32> to vector<32x16xf32>
      %22 = arith.addf %19, %21 : vector<32x16xf32>
      %23 = vector.extract_strided_slice %22 {offsets = [0, 0], sizes = [32, 1], strides = [1, 1]} : vector<32x16xf32> to vector<32x1xf32>
      %24 = vector.extract_strided_slice %22 {offsets = [0, 15], sizes = [32, 1], strides = [1, 1]} : vector<32x16xf32> to vector<32x1xf32>
      %25 = tpu.concatenate %23, %22, %24 in 1 : vector<32x1xf32>, vector<32x16xf32>, vector<32x1xf32> -> vector<32x18xf32>
      %26 = arith.truncf %25 : vector<32x18xf32> to vector<32x18xbf16>
      %c0_17 = arith.constant 0 : index
      %c0_18 = arith.constant 0 : index
      %c0_19 = arith.constant 0 : index
      %27 = vector.load %arg7[%c0_17, %c0_18, %c0_19] : memref<1x64x18xbf16, #tpu.memory_space<vmem>>, vector<1x32x18xbf16>
      %28 = vector.shape_cast %27 : vector<1x32x18xbf16> to vector<32x18xbf16>
      %29 = vector.shape_cast %26 : vector<32x18xbf16> to vector<1x32x18xbf16>
      tpu.vector_store %arg7[%c0_17, %c0_18, %c0_19], %29 {strides = array<i32>} : memref<1x64x18xbf16, #tpu.memory_space<vmem>>, vector<1x32x18xbf16>,
      %c0_20 = arith.constant 0 : index
      %c0_21 = arith.constant 0 : index
      %30 = vector.load %arg3[%c0_20, %c0_21] : memref<32x8xf32, #tpu.memory_space<vmem>>, vector<32x8xf32>
      %c1_22 = arith.constant 1 : index
      %c0_23 = arith.constant 0 : index
      %c0_24 = arith.constant 0 : index
      %31 = vector.load %arg2[%c1_22, %c0_23, %c0_24] : memref<2x8x16xf32, #tpu.memory_space<vmem>>, vector<1x8x16xf32>
      %32 = vector.shape_cast %31 : vector<1x8x16xf32> to vector<8x16xf32>
      %cst_25 = arith.constant dense<0.000000e+00> : vector<32x16xf32>
      %33 = tpu.matmul %30, %32, %cst_25 {dimension_numbers = #tpu.dot_dimension_numbers<[1], [0], [0], [1], [0, 0, 1, 1], [], []>} : vector<32x8xf32>, vector<8x16xf32>, vector<32x16xf32> -> vector<32x16xf32>
      %c0_26 = arith.constant 0 : index
      %c0_27 = arith.constant 0 : index
      %34 = vector.load %arg4[%c0_26, %c0_27] : memref<32x1xf32, #tpu.memory_space<vmem>>, vector<32x1xf32>
      %35 = vector.broadcast %34 : vector<32x1xf32> to vector<32x16xf32>
      %36 = arith.addf %33, %35 : vector<32x16xf32>
      %37 = vector.extract_strided_slice %36 {offsets = [0, 0], sizes = [32, 1], strides = [1, 1]} : vector<32x16xf32> to vector<32x1xf32>
      %38 = vector.extract_strided_slice %36 {offsets = [0, 15], sizes = [32, 1], strides = [1, 1]} : vector<32x16xf32> to vector<32x1xf32>
      %39 = tpu.concatenate %37, %36, %38 in 1 : vector<32x1xf32>, vector<32x16xf32>, vector<32x1xf32> -> vector<32x18xf32>
      %40 = arith.truncf %39 : vector<32x18xf32> to vector<32x18xbf16>
      %c0_28 = arith.constant 0 : index
      %c32 = arith.constant 32 : index
      %c0_29 = arith.constant 0 : index
      %41 = vector.load %arg7[%c0_28, %c32, %c0_29] : memref<1x64x18xbf16, #tpu.memory_space<vmem>>, vector<1x32x18xbf16>
      %42 = vector.shape_cast %41 : vector<1x32x18xbf16> to vector<32x18xbf16>
      %43 = vector.shape_cast %40 : vector<32x18xbf16> to vector<1x32x18xbf16>
      tpu.vector_store %arg7[%c0_28, %c32, %c0_29], %43 {strides = array<i32>} : memref<1x64x18xbf16, #tpu.memory_space<vmem>>, vector<1x32x18xbf16>,
    } else {
    }
    %3 = arith.index_cast %arg1 : i32 to index
    %c0 = arith.constant 0 : index
    %c0_1 = arith.constant 0 : index
    %4 = vector.load %arg7[%3, %c0, %c0_1] : memref<1x64x18xbf16, #tpu.memory_space<vmem>>, vector<1x64x18xbf16>
    %5 = vector.shape_cast %4 : vector<1x64x18xbf16> to vector<64x18xbf16>
    %c0_2 = arith.constant 0 : index
    %c0_3 = arith.constant 0 : index
    %6 = vector.load %arg5[%c0_2, %c0_3] : memref<18x128xbf16, #tpu.memory_space<vmem>>, vector<18x128xbf16>
    %cst = arith.constant dense<0.000000e+00> : vector<64x128xf32>
    %7 = tpu.matmul %5, %6, %cst {dimension_numbers = #tpu.dot_dimension_numbers<[1], [0], [0], [1], [0, 0, 1, 1], [], []>} : vector<64x18xbf16>, vector<18x128xbf16>, vector<64x128xf32> -> vector<64x128xf32>
    %8 = vector.extract_strided_slice %7 {offsets = [0, 0], sizes = [32, 128], strides = [1, 1]} : vector<64x128xf32> to vector<32x128xf32>
    %c0_4 = arith.constant 0 : index
    %c0_5 = arith.constant 0 : index
    %c0_6 = arith.constant 0 : index
    %9 = vector.load %arg6[%c0_4, %c0_5, %c0_6] : memref<2x32x128xf32, #tpu.memory_space<vmem>>, vector<1x32x128xf32>
    %10 = vector.shape_cast %9 : vector<1x32x128xf32> to vector<32x128xf32>
    %11 = vector.shape_cast %8 : vector<32x128xf32> to vector<1x32x128xf32>
    tpu.vector_store %arg6[%c0_4, %c0_5, %c0_6], %11 {strides = array<i32>} : memref<2x32x128xf32, #tpu.memory_space<vmem>>, vector<1x32x128xf32>,
    %12 = vector.extract_strided_slice %7 {offsets = [32, 0], sizes = [32, 128], strides = [1, 1]} : vector<64x128xf32> to vector<32x128xf32>
    %c1 = arith.constant 1 : index
    %c0_7 = arith.constant 0 : index
    %c0_8 = arith.constant 0 : index
    %13 = vector.load %arg6[%c1, %c0_7, %c0_8] : memref<2x32x128xf32, #tpu.memory_space<vmem>>, vector<1x32x128xf32>
    %14 = vector.shape_cast %13 : vector<1x32x128xf32> to vector<32x128xf32>
    %15 = vector.shape_cast %12 : vector<32x128xf32> to vector<1x32x128xf32>
    tpu.vector_store %arg6[%c1, %c0_7, %c0_8], %15 {strides = array<i32>} : memref<2x32x128xf32, #tpu.memory_space<vmem>>, vector<1x32x128xf32>,
    return
  }
  func.func @transform_0(%arg0: i32, %arg1: i32) -> (i32, i32, i32) {
    %c0_i32 = arith.constant 0 : i32
    %c0_i32_0 = arith.constant 0 : i32
    %c0_i32_1 = arith.constant 0 : i32
    return %arg0, %c0_i32, %c0_i32_0 : i32, i32, i32
  }
  func.func @transform_1(%arg0: i32, %arg1: i32) -> (i32, i32) {
    %c0_i32 = arith.constant 0 : i32
    %c0_i32_0 = arith.constant 0 : i32
    %c0_i32_1 = arith.constant 0 : i32
    return %c0_i32, %c0_i32_0 : i32, i32
  }
  func.func @transform_2(%arg0: i32, %arg1: i32) -> (i32, i32) {
    %c0_i32 = arith.constant 0 : i32
    %c0_i32_0 = arith.constant 0 : i32
    %c0_i32_1 = arith.constant 0 : i32
    return %c0_i32, %c0_i32_0 : i32, i32
  }
  func.func @transform_3(%arg0: i32, %arg1: i32) -> (i32, i32) {
    %c0_i32 = arith.constant 0 : i32
    %c0_i32_0 = arith.constant 0 : i32
    %c0_i32_1 = arith.constant 0 : i32
    return %c0_i32, %c0_i32_0 : i32, i32
  }
  func.func @transform_4(%arg0: i32, %arg1: i32) -> (i32, i32, i32) {
    %c0_i32 = arith.constant 0 : i32
    %c0_i32_0 = arith.constant 0 : i32
    return %arg0, %c0_i32, %arg1 : i32, i32, i32
  }
}

</mosaic_0001>

<bundles_post_ra>
// kernel: tpu_custom_call.1
= control target key start
LH: loop header
LB: loop body
LE: loop exit
PB: predicated region body
PF: predicated region fallthrough
CT: control target
= control target key end

     0   :  { %vm52_vm0 = vcmask 64512   ;;  %s752_s0 = inlined_call_operand.vmem [shape: f32[2,8,16], index: 0, kind: input, shape index: {}]   ;;  %s753_s1 = inlined_call_operand.vmem [shape: f32[32,8], index: 1, kind: input, shape index: {}]   ;;  %s754_s2 = inlined_call_operand.vmem [shape: f32[32,1], index: 2, kind: input, shape index: {}]   ;;  %s755_s3 = inlined_call_operand.vmem [shape: bf16[18,128], index: 3, kind: input, shape index: {}]   ;;  %s756_s4 = inlined_call_operand.hbm [shape: f32[2,32,128], index: 4, kind: output, shape index: {}]  }
   0x1   :  { %v27_v0 = vld [vmem:[%s752_s0] sm:$0xff]  ;;  %v490_v1 = vld [vmem:[%s752_s0 + $0x8] sm:$0xff]  ;;  %v25_v4 = vld [vmem:[%s753_s1 + $0x10] sm:$0xff] }
   0x2   :  { %v23_v2 = vld [vmem:[%s753_s1] sm:$0xff]  ;;  %517 = vmatprep.subr.mxu0 %v27_v0  ;;  %525 = vmatprep.subr.mxu1 %v490_v1  ;;  %v24_v3 = vld [vmem:[%s753_s1 + $0x8] sm:$0xff] }
   0x3   :  { %518 = vmatpush3.msra.mxu0 %v27_v0  ;;  %519 = vmatprep.mubr.msk.f32.mxu0 %vm52_vm0, %v23_v2  ;;  %v199_v5 = vld [vmem:[%s754_s2] sm:$0xff] }
   0x4   :  { %526 = vmatpush3.msra.mxu1 %v490_v1  ;;  %527 = vmatprep.mubr.msk.f32.mxu1 %vm52_vm0, %v23_v2 }
   0x5   :  { %520 = vmatmul.mubr.msk.f32.vlgmr.msra.gmra.mrb[0].mxu0 %vm52_vm0, %v24_v3  ;;  %528 = vmatmul.mubr.msk.f32.vlgmr.msra.gmra.mrb[0].mxu1 %vm52_vm0, %v24_v3 }
   0x6   :  { %9 = vsyncpa [#allocation4], 0  ;;  %522 = vmatprep.mubr.msk.f32.mxu0 %vm52_vm0, %v25_v4  ;;  %530 = vmatprep.mubr.msk.f32.mxu1 %vm52_vm0, %v25_v4  ;;  %v26_v6 = vld [vmem:[%s753_s1 + $0x18] sm:$0xff]  ;;  %v625_v7 = vmov 0   ;;  %v200_v8 = vld [vmem:[%s754_s2 + $0x8] sm:$0xff]  ;;  %s627_s9 = smov 2  }
   0x7   :  { %558 = vset.pattern.permute.xlu1 %v625_v7  ;;  %557 = vset.pattern.permute.xlu0 %v625_v7  ;;  %v31_v9 = vld [vmem:[%s754_s2 + $0x18] sm:$0xff]  ;;  %v30_v10 = vld [vmem:[%s754_s2 + $0x10] sm:$0xff]  ;;  %s626_s2 = smov 1   ;;  %v599_v38 = vld [vmem:[%s755_s3] sm:$0xff]   ;;  %vm392_vm1 = vcmask 1040384   ;;  %vm178_vm2 = vcmask 7168  }
   0x8   :  { %205 = vperm.xlu1 %558, %v199_v5   ;;  %34 = vperm.xlu0 %557, %v199_v5   ;;  %v600_v39 = vld [vmem:[%s755_s3 + $0x8] ss:$0 sps:$4 sm:$0x11]   ;;  %vm183_vm3 = vcmask 138240   ;;  %vm190_vm4 = vcmask 146432   ;;  %s628_s3 = smov [#allocation3]  }
   0x9   :  { %523 = vmatmul.mubr.msk.f32.gmra.mrb[2].mxu0 %vm52_vm0, %v26_v6  ;;  %531 = vmatmul.mubr.msk.f32.gmra.mrb[2].mxu1 %vm52_vm0, %v26_v6  ;;  %v394_v41 = vsel %vm392_vm1, %v600_v39, 0  ;;  %s475_s12 = sshll.u32 %s628_s3, 4  ;;  %s476_s12 = int_to_ptr.vmem [resolvable:$true] %s475_s12 }
   0xa   :  { %533 = vmatprep.subr.bf16.mxu0 %v599_v38  ;;  %545 = vmatprep.subr.bf16.mxu1 %v599_v38  ;;  %s601_s13 = scalar_lea.vmem %s476_s12, 1024  ;;  %p606_p1 = scmp.lt.s32.totalorder %s476_s12, %s476_s12 }
   0xb   :  { %534 = vmatpush3.bf16.msra.mxu0 %v599_v38  ;;  %547 = vmatpush3.bf16.msra.mxu1 %v599_v38  ;;  %p602_p0 = scmp.ne.s32.totalorder %s476_s12, %s601_s13  ;;  %p607_p2 = scmp.lt.s32.totalorder %s601_s13, %s601_s13 }
   0xc   :  { %210 = vperm.xlu1 %558, %v200_v8   ;;  %39 = vperm.xlu0 %557, %v200_v8  }
   0xd   :  { %549 = vmatprep.subr.msk.bf16.mxu0 %vm392_vm1, %v600_v39  ;;  %550 = vmatprep.subr.msk.bf16.mxu1 %vm392_vm1, %v600_v39  ;;  %p608_p3 = por %p607_p2, %p606_p1 }
   0xf   :  { %536 = vmatpush3.bf16.msra.mxu0 %v394_v41  ;;  %548 = vmatpush3.bf16.msra.mxu1 %v394_v41  ;;  %p609_p4 = pnand %p608_p3, %p602_p0 }
  0x10   :  { %49 = vperm.xlu1 %558, %v31_v9   ;;  %44 = vperm.xlu0 %557, %v30_v10  }
  0x14   :  { %220 = vperm.xlu1 %558, %v31_v9   ;;  %215 = vperm.xlu0 %557, %v30_v10  }
  0x87   :  { %v206_v11 = vpop.permute.xlu1 %205  ;;  %v35_v12 = vpop.permute.xlu0 %34 }
  0x8b   :  { %v211_v13 = vpop.permute.xlu1 %210  ;;  %v40_v14 = vpop.permute.xlu0 %39 }
  0x8f   :  { %v50_v15 = vpop.permute.xlu1 %49  ;;  %v45_v16 = vpop.permute.xlu0 %44 }
  0x93   :  { %v221_v33 = vpop.permute.xlu1 %220  ;;  %v216_v34 = vpop.permute.xlu0 %215 }
  0xd8   :  { %v521_v17 = vpop.f32.mrb[0].mxu0  ;;  %v529_v18 = vpop.f32.mrb[0].mxu1 }
  0xd9   :  { %v137_v19 = vadd.f32 %v521_v17, %v40_v14  ;;  %v307_v20 = vadd.f32 %v529_v18, %v211_v13  ;;  %v131_v21 = vpop.f32.mrb[1].mxu0  ;;  %v301_v22 = vpop.f32.mrb[1].mxu1 }
  0xda   :  { %v132_v23 = vadd.f32 %v131_v21, %v35_v12  ;;  %v302_v24 = vadd.f32 %v301_v22, %v206_v11 }
  0xdc   :  { %v524_v25 = vpop.f32.mrb[2].mxu0  ;;  %v532_v26 = vpop.f32.mrb[2].mxu1  ;;  %v564_v27 = vpack.i.bf16 %v307_v20, %v302_v24  ;;  %v559_v28 = vpack.i.bf16 %v137_v19, %v132_v23 }
  0xdd   :  { %v694_v29 = vadd.f32 %v524_v25, %v50_v15  ;;  %v141_v30 = vpop.f32.mrb[3].mxu0  ;;  %v311_v31 = vpop.f32.mrb[3].mxu1  ;;  %v698_v35 = vadd.f32 %v532_v26, %v221_v33 }
  0xde   :  { %v696_v32 = vadd.f32 %v141_v30, %v45_v16  ;;  %565 = vrot.lane.b32.xlu1 %v564_v27, %s626_s2  ;;  %560 = vrot.lane.b32.xlu0 %v559_v28, %s626_s2  ;;  %v700_v36 = vadd.f32 %v311_v31, %v216_v34 }
  0xe0   :  { %v579_v37 = vpack.i.bf16 %v694_v29, %v696_v32  ;;  %v584_v40 = vpack.i.bf16 %v698_v35, %v700_v36 }
  0xe2   :  { %570 = vrot.lane.b32.xlu1 %v559_v28, %s627_s9  ;;  %580 = vrot.lane.b32.xlu0 %v579_v37, %s626_s2 }
  0xe6   :  { %575 = vrot.lane.b32.xlu1 %v564_v27, %s627_s9  ;;  %585 = vrot.lane.b32.xlu0 %v584_v40, %s626_s2 }
  0xea   :  { %595 = vrot.lane.b32.xlu1 %v584_v40, %s627_s9  ;;  %590 = vrot.lane.b32.xlu0 %v579_v37, %s627_s9 }
 0x150   :  { %v566_v42 = vpop.permute.xlu1 %565  ;;  %v561_v43 = vpop.permute.xlu0 %560 }
 0x151   :  { %v563_v44 = vunpack.i.h.bf16 %v561_v43  ;;  %v562_v45 = vunpack.i.l.bf16 %v561_v43  ;;  %v568_v48 = vunpack.i.h.bf16 %v566_v42  ;;  %v567_v49 = vunpack.i.l.bf16 %v566_v42 }
 0x153   :  { %v180_v52 = vsel %vm178_vm2, %v137_v19, %v563_v44  ;;  %v179_v53 = vsel %vm178_vm2, %v132_v23, %v562_v45  ;;  %v349_v59 = vsel %vm178_vm2, %v307_v20, %v568_v48  ;;  %v348_v60 = vsel %vm178_vm2, %v302_v24, %v567_v49 }
 0x154   :  { %v571_v46 = vpop.permute.xlu1 %570  ;;  %v581_v47 = vpop.permute.xlu0 %580 }
 0x155   :  { %v573_v50 = vunpack.i.h.bf16 %v571_v46  ;;  %v572_v51 = vunpack.i.l.bf16 %v571_v46  ;;  %v583_v63 = vunpack.i.h.bf16 %v581_v47  ;;  %v582_v0 = vunpack.i.l.bf16 %v581_v47 }
 0x157   :  { %v184_v54 = vsel %vm183_vm3, %v179_v53, %v572_v51  ;;  %v185_v55 = vsel %vm183_vm3, %v180_v52, %v573_v50  ;;  %v182_v12 = vsel %vm178_vm2, %v694_v29, %v583_v63  ;;  %v181_v13 = vsel %vm178_vm2, %v696_v32, %v582_v0 }
 0x158   :  { %v188_v56 = vpack.c.bf16 %v185_v55, %v184_v54  ;;  %v576_v57 = vpop.permute.xlu1 %575  ;;  %v586_v58 = vpop.permute.xlu0 %585 }
 0x159   :  { %v578_v61 = vunpack.i.h.bf16 %v576_v57  ;;  %v577_v62 = vunpack.i.l.bf16 %v576_v57  ;;  %v588_v1 = vunpack.i.h.bf16 %v586_v58  ;;  %v587_v2 = vunpack.i.l.bf16 %v586_v58 }
 0x15a   :  { %191 = vst.msk [vmem:[#allocation2] sm:$0xff] %vm190_vm4, %v188_v56 }
 0x15b   :  { %v353_v3 = vsel %vm183_vm3, %v349_v59, %v578_v61  ;;  %v352_v4 = vsel %vm183_vm3, %v348_v60, %v577_v62  ;;  %v351_v14 = vsel %vm178_vm2, %v698_v35, %v588_v1  ;;  %v350_v15 = vsel %vm178_vm2, %v700_v36, %v587_v2 }
 0x15c   :  { %v356_v5 = vpack.c.bf16 %v353_v3, %v352_v4  ;;  %v596_v6 = vpop.permute.xlu1 %595  ;;  %v591_v7 = vpop.permute.xlu0 %590 }
 0x15d   :  { %v598_v8 = vunpack.i.h.bf16 %v596_v6  ;;  %v597_v9 = vunpack.i.l.bf16 %v596_v6  ;;  %v593_v10 = vunpack.i.h.bf16 %v591_v7  ;;  %v592_v11 = vunpack.i.l.bf16 %v591_v7 }
 0x15e   :  { %358 = vst.msk [vmem:[#allocation2 + $0x10] sm:$0xff] %vm190_vm4, %v356_v5 }
 0x15f   :  { %v354_v16 = vsel %vm183_vm3, %v350_v15, %v597_v9  ;;  %v355_v17 = vsel %vm183_vm3, %v351_v14, %v598_v8  ;;  %v186_v18 = vsel %vm183_vm3, %v181_v13, %v592_v11  ;;  %v187_v19 = vsel %vm183_vm3, %v182_v12, %v593_v10 }
 0x160   :  { %v357_v20 = vpack.c.bf16 %v355_v17, %v354_v16  ;;  %v189_v21 = vpack.c.bf16 %v187_v19, %v186_v18 }
 0x161   :  { %v363_v22 = vld [vmem:[#allocation2] sm:$0xff] }
 0x162   :  { %359 = vst.msk [vmem:[#allocation2 + $0x18] sm:$0xff] %vm190_vm4, %v357_v20  ;;  %192 = vst.msk [vmem:[#allocation2 + $0x8] sm:$0xff] %vm190_vm4, %v189_v21  ;;  %537 = vmatprep.mubr.msk.bf16.mxu0 %vm190_vm4, %v363_v22 }
 0x165   :  { %v365_v23 = vld [vmem:[#allocation2 + $0x10] sm:$0xff] }
 0x166   :  { %541 = vmatprep.mubr.msk.bf16.mxu1 %vm190_vm4, %v365_v23 }
 0x169   :  { %v364_v24 = vld [vmem:[#allocation2 + $0x8] sm:$0xff]  ;;  %v366_v25 = vld [vmem:[#allocation2 + $0x18] sm:$0xff] }
 0x16a   :  { %538 = vmatmul.mubr.msk.bf16.vlgmr.msra.gmra.mrb[4].mxu0 %vm190_vm4, %v364_v24  ;;  %542 = vmatmul.mubr.msk.bf16.vlgmr.msra.gmra.mrb[4].mxu1 %vm190_vm4, %v366_v25 }
 0x23d   :  { %v539_v26 = vpop.f32.mrb[4].mxu0  ;;  %v543_v27 = vpop.f32.mrb[4].mxu1 }
 0x23e   :  { %463 = vst [vmem:[#allocation3 + $0x10] sm:$0xff] %v539_v26  ;;  %468 = vst [vmem:[#allocation3 + $0x30] sm:$0xff] %v543_v27  ;;  %v430_v28 = vpop.f32.mrb[5].mxu0  ;;  %v446_v29 = vpop.f32.mrb[5].mxu1 }
 0x23f   :  { %461 = vst [vmem:[#allocation3] sm:$0xff] %v430_v28  ;;  %466 = vst [vmem:[#allocation3 + $0x20] sm:$0xff] %v446_v29  ;;  %v540_v30 = vpop.f32.mrb[6].mxu0  ;;  %v544_v31 = vpop.f32.mrb[6].mxu1 }
 0x240   :  { %464 = vst [vmem:[#allocation3 + $0x18] sm:$0xff] %v540_v30  ;;  %469 = vst [vmem:[#allocation3 + $0x38] sm:$0xff] %v544_v31  ;;  %v433_v32 = vpop.f32.mrb[7].mxu0  ;;  %v449_v33 = vpop.f32.mrb[7].mxu1 }
 0x241   :  { %462 = vst [vmem:[#allocation3 + $0x8] sm:$0xff] %v433_v32  ;;  %467 = vst [vmem:[#allocation3 + $0x28] sm:$0xff] %v449_v33 }
 0x242   :  { %612 = shalt.err (!%p609_p4)
}
 0x243   :  { %s613_s16 = scalar_lea.hbm %s756_s4, 1024 }
 0x244   :  { %p614_p5 = scmp.ne.s32.totalorder %s756_s4, %s613_s16  ;;  %p617_p6 = scmp.lt.u32.totalorder %s613_s16, %s756_s4 }
 0x246   :  { %p619_p7 = pnand %p617_p6, %p614_p5 }
 0x248   :  { %622 = shalt.err (!%p619_p7)
}
 0x249   :  { %s629_s21 = smov 128   ;;  %s630_s22 = smov 8  }
 0x24a   :  { %481 = dma.vmem_to_hbm [thread:$0]  %s476_s12, 1024, %s756_s4, [#allocation4], %s629_s21, %s629_s21, %s630_s22  }
 0x24b   :  { %623 = dma.done.wait [#allocation4], 1024  }
 0x24c   :  { %624 = vsyncadd [#allocation4], 4294966272 }
 0x24d   :  { %485 = vsyncpa [#allocation4], 1 }

</bundles_post_ra>
